<compile_context>
chip_gen: v6e
topology: v6e:2x2x1
jax: 0.10.0
libtpu: 0.0.40
codegen_flags: <defaults>
</compile_context>

<pallas_src>
import functools

import jax
import jax.numpy as jnp
from jax.experimental import pallas as pl
from jax.experimental.pallas import tpu as pltpu

F_PAD = 128                      # all feature dims padded to one lane width
TILE_M = 512                     # row tile (tiled path)
TILE_K = 512                     # A-column / X-row tile (tiled path)
FUSE_MAX_N_PAD = 2048            # fused path iff bf16 A_hat <= 8 MiB (fits all gens)
VMEM_LIMIT_BYTES = 48 * 1024 * 1024


def _round_up(x, m):
    return ((x + m - 1) // m) * m


def _resident_spec(block_shape, index_map):
    """BlockSpec for an operand whose block never changes across the grid.

    Requests a single VMEM buffer (pl.Buffered(1)) so the resident block is
    not double-buffered; falls back to a default spec if this Pallas build
    does not accept pipeline_mode.
    """
    try:
        return pl.BlockSpec(block_shape, index_map, pipeline_mode=pl.Buffered(1))
    except (TypeError, AttributeError):
        return pl.BlockSpec(block_shape, index_map)


# ----------------------------------------------------------------------------
# Fused path: both GCN layers in one pallas_call (A_hat streamed from HBM once,
# h kept in a bf16 VMEM scratch).
# ----------------------------------------------------------------------------
def _gcn_fused_kernel(a_ref, x_ref, w1_ref, b1_ref, w2_ref, b2_ref, o_ref, h_ref):
    # layer 1: bf16 MXU aggregation with f32 accumulation, f32 transform/bias
    agg1 = jnp.dot(a_ref[...], x_ref[...], preferred_element_type=jnp.float32)
    h = jnp.dot(agg1, w1_ref[...], preferred_element_type=jnp.float32) + b1_ref[...]
    # padded rows of h hold relu(b1) (nonzero), but A_hat's padded columns are
    # zero so they never contribute to real outputs.
    h_ref[...] = jnp.maximum(h, 0.0).astype(h_ref.dtype)
    # layer 2: A_hat reused straight from VMEM (no second HBM stream)
    agg2 = jnp.dot(a_ref[...], h_ref[...], preferred_element_type=jnp.float32)
    o_ref[...] = (jnp.dot(agg2, w2_ref[...], preferred_element_type=jnp.float32)
                  + b2_ref[...])


def _gcn_fused(a, x, w1, b1, w2, b2):
    n_pad = a.shape[0]
    f = F_PAD
    flops = int(2 * 2 * n_pad * n_pad * f + 2 * 2 * n_pad * f * f)
    bytes_accessed = int(a.size * 2 + x.size * 2 + 2 * f * f * 4 + 2 * f * 4
                         + n_pad * f * 4)
    return pl.pallas_call(
        _gcn_fused_kernel,
        out_shape=jax.ShapeDtypeStruct((n_pad, f), jnp.float32),
        grid=(1,),
        in_specs=[
            _resident_spec((n_pad, n_pad), lambda i: (0, 0)),  # A_hat (bf16)
            _resident_spec((n_pad, f), lambda i: (0, 0)),      # X (bf16)
            _resident_spec((f, f), lambda i: (0, 0)),          # W1
            _resident_spec((1, f), lambda i: (0, 0)),          # b1
            _resident_spec((f, f), lambda i: (0, 0)),          # W2
            _resident_spec((1, f), lambda i: (0, 0)),          # b2
        ],
        out_specs=pl.BlockSpec((n_pad, f), lambda i: (0, 0)),
        scratch_shapes=[pltpu.VMEM((n_pad, f), jnp.bfloat16)],   # h stays on-chip
        compiler_params=pltpu.CompilerParams(
            dimension_semantics=("arbitrary",),
            vmem_limit_bytes=VMEM_LIMIT_BYTES),
        cost_estimate=pl.CostEstimate(
            flops=flops, transcendentals=0, bytes_accessed=bytes_accessed),
    )(a, x, w1, b1, w2, b2)


# ----------------------------------------------------------------------------
# Tiled path (large graphs): one GCN layer, K-tiled aggregation with an f32
# accumulator; o[tile] = act((A_hat[tile, :] @ X) @ W + b).
# ----------------------------------------------------------------------------
def _gcn_layer_kernel(a_ref, x_ref, w_ref, b_ref, o_ref, acc_ref, *, apply_relu):
    k = pl.program_id(1)

    @pl.when(k == 0)
    def _():
        acc_ref[...] = jnp.zeros_like(acc_ref)

    # (tm, tk) bf16 @ (tk, F_PAD) bf16 -> f32 accumulation on the MXU
    acc_ref[...] += jnp.dot(a_ref[...], x_ref[...],
                            preferred_element_type=jnp.float32)

    @pl.when(k == pl.num_programs(1) - 1)
    def _():
        out = jnp.dot(acc_ref[...], w_ref[...],
                      preferred_element_type=jnp.float32) + b_ref[...]
        if apply_relu:
            out = jnp.maximum(out, 0.0)
        o_ref[...] = out.astype(o_ref.dtype)


def _gcn_layer_tiled(a, x, w, b, *, apply_relu, out_dtype, tm, tk):
    n_pad = a.shape[0]
    f = F_PAD
    grid = (n_pad // tm, n_pad // tk)
    out_bytes = 2 if out_dtype == jnp.bfloat16 else 4
    flops = int(2 * n_pad * n_pad * f + 2 * n_pad * f * f)
    bytes_accessed = int(a.size * 2 + x.size * 2 + w.size * 4 + b.size * 4
                         + n_pad * f * out_bytes)
    return pl.pallas_call(
        functools.partial(_gcn_layer_kernel, apply_relu=apply_relu),
        out_shape=jax.ShapeDtypeStruct((n_pad, f), out_dtype),
        grid=grid,
        in_specs=[
            pl.BlockSpec((tm, tk), lambda i, k: (i, k)),        # A tile (streamed)
            pl.BlockSpec((tk, f), lambda i, k: (k, 0)),         # X k-slab (streamed)
            _resident_spec((f, f), lambda i, k: (0, 0)),        # W (resident)
            _resident_spec((1, f), lambda i, k: (0, 0)),        # b (resident)
        ],
        out_specs=pl.BlockSpec((tm, f), lambda i, k: (i, 0)),
        scratch_shapes=[pltpu.VMEM((tm, f), jnp.float32)],       # f32 accumulator
        compiler_params=pltpu.CompilerParams(
            dimension_semantics=("parallel", "arbitrary"),
            vmem_limit_bytes=VMEM_LIMIT_BYTES),
        cost_estimate=pl.CostEstimate(
            flops=flops, transcendentals=0, bytes_accessed=bytes_accessed),
    )(a, x, w, b)


# ----------------------------------------------------------------------------
# Host-side wrapper
# ----------------------------------------------------------------------------
def _normalized_adjacency_padded(edge_index, n, n_pad):
    """Padded bf16 A_hat built directly at padded size (no unpadded f32 copy).

    TODO(synk): torch_geometric uses sparse message passing; the graph is
    densified here.  The normalize+cast could itself be a small Pallas kernel
    to avoid the f32 n_pad^2 intermediate entirely.
    """
    src, dst = edge_index[0], edge_index[1]
    a = jnp.zeros((n_pad, n_pad), jnp.float32).at[dst, src].add(1.0)
    idx = jnp.arange(n)
    a = a.at[idx, idx].add(1.0)                      # self-loops on real nodes
    deg = a.sum(axis=1)
    dinv = jnp.where(deg > 0.0, jax.lax.rsqrt(deg), 0.0)
    return (dinv[:, None] * a * dinv[None, :]).astype(jnp.bfloat16)


@functools.partial(jax.jit, static_argnames=("force_tiled",))
def gcn_forward(x, edge_index, w1, b1, w2, b2, *, force_tiled=False):
    """Net.forward: GCNConv(2,16) -> ReLU -> GCNConv(16,1)."""
    n, f_in = x.shape
    f_hid = w1.shape[1]
    f_out = w2.shape[1]

    use_fused = (not force_tiled) and (_round_up(n, 128) <= FUSE_MAX_N_PAD)
    n_pad = _round_up(n, 128) if use_fused else _round_up(n, TILE_K)

    # padded bf16 normalized adjacency, built directly at padded size
    a_p = _normalized_adjacency_padded(edge_index, n, n_pad)

    # aggregation operands pre-cast to bf16 (MXU path, f32 accumulation);
    # weights / biases stay f32 and all feature dims are lane-dense (128)
    x_p = jnp.zeros((n_pad, F_PAD), jnp.bfloat16).at[:n, :f_in].set(
        x.astype(jnp.bfloat16))
    w1_p = jnp.zeros((F_PAD, F_PAD), jnp.float32).at[:f_in, :f_hid].set(w1)
    b1_p = jnp.zeros((1, F_PAD), jnp.float32).at[0, :f_hid].set(b1)
    w2_p = jnp.zeros((F_PAD, F_PAD), jnp.float32).at[:f_hid, :f_out].set(w2)
    b2_p = jnp.zeros((1, F_PAD), jnp.float32).at[0, :f_out].set(b2)

    if use_fused:
        out = _gcn_fused(a_p, x_p, w1_p, b1_p, w2_p, b2_p)
    else:
        tm = min(TILE_M, n_pad)
        tk = min(TILE_K, n_pad)
        # h is kept in bf16 end-to-end: halves its HBM round trip and feeds
        # layer 2's MXU aggregation without any in-kernel cast.
        h = _gcn_layer_tiled(a_p, x_p, w1_p, b1_p, apply_relu=True,
                             out_dtype=jnp.bfloat16, tm=tm, tk=tk)
        out = _gcn_layer_tiled(a_p, h, w2_p, b2_p, apply_relu=False,
                               out_dtype=jnp.float32, tm=tm, tk=tk)
    return out[:n, :f_out]


def ref_forward(x, edge_index, w1, b1, w2, b2):
    """Pure-JAX f32 reference (mirrors torch_geometric GCNConv semantics)."""
    n = x.shape[0]
    a = jnp.zeros((n, n), jnp.float32).at[edge_index[1], edge_index[0]].add(1.0)
    a = a + jnp.eye(n, dtype=jnp.float32)
    deg = a.sum(axis=1)
    dinv = jnp.where(deg > 0, 1.0 / jnp.sqrt(deg), 0.0)
    a_hat = dinv[:, None] * a * dinv[None, :]
    h = jnp.maximum(a_hat @ (x @ w1) + b1, 0.0)
    return a_hat @ (h @ w2) + b2


if __name__ == "__main__":
    key = jax.random.PRNGKey(0)
    k1, k2, k3, k4 = jax.random.split(key, 4)

    def ring_edges(n):
        # undirected ring graph: edges in both directions, shape [2, 2n]
        s = jnp.arange(n, dtype=jnp.int32)
        d = (s + 1) % n
        return jnp.stack([jnp.concatenate([s, d]), jnp.concatenate([d, s])], axis=0)

    # deterministic synthetic parameters (GCNConv(2,16) and GCNConv(16,1))
    w1 = jax.random.normal(k2, (2, 16), jnp.float32) / jnp.sqrt(2.0)
    b1 = 0.01 * jnp.arange(16, dtype=jnp.float32)
    w2 = jax.random.normal(k3, (16, 1), jnp.float32) / 4.0
    b2 = jnp.array([0.05], jnp.float32)

    # --- small graph: fused single-pallas_call path (A_hat streamed once) ---
    N = 16
    edge_index = ring_edges(N)
    x = jax.random.normal(k1, (N, 2), jnp.float32)
    out = jax.block_until_ready(gcn_forward(x, edge_index, w1, b1, w2, b2))
    ref = ref_forward(x, edge_index, w1, b1, w2, b2)
    assert out.shape == (N, 1), out.shape
    # tolerance loosened vs f32 reference: the N^2 aggregation operands
    # (A_hat, X / h) are intentionally bf16 on the MXU (f32 accumulation).
    assert jnp.allclose(out, ref, atol=5e-2, rtol=5e-2), \
        float(jnp.max(jnp.abs(out - ref)))

    # --- larger graph: exercise the K-tiled / row-parallel two-call path ---
    N2 = 1100
    edge_index2 = ring_edges(N2)
    x2 = jax.random.normal(k4, (N2, 2), jnp.float32)
    out2 = jax.block_until_ready(
        gcn_forward(x2, edge_index2, w1, b1, w2, b2, force_tiled=True))
    ref2 = ref_forward(x2, edge_index2, w1, b1, w2, b2)
    assert out2.shape == (N2, 1), out2.shape
    assert jnp.allclose(out2, ref2, atol=1e-1, rtol=1e-1), \
        float(jnp.max(jnp.abs(out2 - ref2)))

    print("KERNEL_OK")
</pallas_src>

<mosaic_0001>
module attributes {stable_mosaic.version = 11 : i64} {
  func.func private @main(%arg0: i32) attributes {dimension_semantics = [#tpu.dimension_semantics<core_parallel>], iteration_bounds = array<i64: 2>, tpu.core_type = #tpu.core_type<sc_scalar_subcore>, window_params = []} {
    return
  }
}

module attributes {stable_mosaic.version = 11 : i64} {
  func.func private @main(%arg0: i32) attributes {dimension_semantics = [#tpu.dimension_semantics<core_parallel>], iteration_bounds = array<i64: 2>, tpu.core_type = #tpu.core_type<sc_scalar_subcore>, window_params = []} {
    return
  }
}

module attributes {stable_mosaic.version = 11 : i64} {
  func.func @_gcn_fused_kernel(%arg0: i32, %arg1: memref<128x128xbf16, #tpu.memory_space<vmem>>, %arg2: memref<128x128xbf16, #tpu.memory_space<vmem>>, %arg3: memref<128x128xf32, #tpu.memory_space<vmem>>, %arg4: memref<1x128xf32, #tpu.memory_space<vmem>>, %arg5: memref<128x128xf32, #tpu.memory_space<vmem>>, %arg6: memref<1x128xf32, #tpu.memory_space<vmem>>, %arg7: memref<128x128xf32, #tpu.memory_space<vmem>>, %arg8: memref<128x128xbf16, #tpu.memory_space<vmem>>) attributes {dimension_semantics = [#tpu.dimension_semantics<arbitrary>], iteration_bounds = array<i64: 1>, scalar_prefetch = 0 : i64, scratch_operands = 1 : i64, tpu.core_type = #tpu.core_type<tc>, window_params = [{pipeline_mode = #tpu.pipeline_mode<synchronous>, transform_indices = @transform_0, window_bounds = array<i64: 128, 128>}, {pipeline_mode = #tpu.pipeline_mode<synchronous>, transform_indices = @transform_1, window_bounds = array<i64: 128, 128>}, {pipeline_mode = #tpu.pipeline_mode<synchronous>, transform_indices = @transform_2, window_bounds = array<i64: 128, 128>}, {pipeline_mode = #tpu.pipeline_mode<synchronous>, transform_indices = @transform_3, window_bounds = array<i64: 1, 128>}, {pipeline_mode = #tpu.pipeline_mode<synchronous>, transform_indices = @transform_4, window_bounds = array<i64: 128, 128>}, {pipeline_mode = #tpu.pipeline_mode<synchronous>, transform_indices = @transform_5, window_bounds = array<i64: 1, 128>}, {pipeline_mode = #tpu.pipeline_mode<synchronous>, transform_indices = @transform_6, window_bounds = array<i64: 128, 128>}]} {
    %c0 = arith.constant 0 : index
    %c0_0 = arith.constant 0 : index
    %0 = vector.load %arg1[%c0, %c0_0] : memref<128x128xbf16, #tpu.memory_space<vmem>>, vector<128x128xbf16>
    %c0_1 = arith.constant 0 : index
    %c0_2 = arith.constant 0 : index
    %1 = vector.load %arg2[%c0_1, %c0_2] : memref<128x128xbf16, #tpu.memory_space<vmem>>, vector<128x128xbf16>
    %cst = arith.constant dense<0.000000e+00> : vector<128x128xf32>
    %2 = tpu.matmul %0, %1, %cst {dimension_numbers = #tpu.dot_dimension_numbers<[1], [0], [0], [1], [0, 0, 1, 1], [], []>} : vector<128x128xbf16>, vector<128x128xbf16>, vector<128x128xf32> -> vector<128x128xf32>
    %c0_3 = arith.constant 0 : index
    %c0_4 = arith.constant 0 : index
    %3 = vector.load %arg3[%c0_3, %c0_4] : memref<128x128xf32, #tpu.memory_space<vmem>>, vector<128x128xf32>
    %cst_5 = arith.constant dense<0.000000e+00> : vector<128x128xf32>
    %4 = tpu.matmul %2, %3, %cst_5 {dimension_numbers = #tpu.dot_dimension_numbers<[1], [0], [0], [1], [0, 0, 1, 1], [], []>} : vector<128x128xf32>, vector<128x128xf32>, vector<128x128xf32> -> vector<128x128xf32>
    %c0_6 = arith.constant 0 : index
    %c0_7 = arith.constant 0 : index
    %5 = vector.load %arg4[%c0_6, %c0_7] : memref<1x128xf32, #tpu.memory_space<vmem>>, vector<1x128xf32>
    %6 = vector.broadcast %5 : vector<1x128xf32> to vector<128x128xf32>
    %7 = arith.addf %4, %6 : vector<128x128xf32>
    %cst_8 = arith.constant 0.000000e+00 : f32
    %8 = vector.broadcast %cst_8 : f32 to vector<128x128xf32>
    %9 = arith.maximumf %7, %8 : vector<128x128xf32>
    %10 = arith.truncf %9 : vector<128x128xf32> to vector<128x128xbf16>
    %c0_9 = arith.constant 0 : index
    %c0_10 = arith.constant 0 : index
    %11 = vector.load %arg8[%c0_9, %c0_10] : memref<128x128xbf16, #tpu.memory_space<vmem>>, vector<128x128xbf16>
    tpu.vector_store %arg8[%c0_9, %c0_10], %10 {strides = array<i32>} : memref<128x128xbf16, #tpu.memory_space<vmem>>, vector<128x128xbf16>,
    %c0_11 = arith.constant 0 : index
    %c0_12 = arith.constant 0 : index
    %12 = vector.load %arg1[%c0_11, %c0_12] : memref<128x128xbf16, #tpu.memory_space<vmem>>, vector<128x128xbf16>
    %c0_13 = arith.constant 0 : index
    %c0_14 = arith.constant 0 : index
    %13 = vector.load %arg8[%c0_13, %c0_14] : memref<128x128xbf16, #tpu.memory_space<vmem>>, vector<128x128xbf16>
    %cst_15 = arith.constant dense<0.000000e+00> : vector<128x128xf32>
    %14 = tpu.matmul %12, %13, %cst_15 {dimension_numbers = #tpu.dot_dimension_numbers<[1], [0], [0], [1], [0, 0, 1, 1], [], []>} : vector<128x128xbf16>, vector<128x128xbf16>, vector<128x128xf32> -> vector<128x128xf32>
    %c0_16 = arith.constant 0 : index
    %c0_17 = arith.constant 0 : index
    %15 = vector.load %arg5[%c0_16, %c0_17] : memref<128x128xf32, #tpu.memory_space<vmem>>, vector<128x128xf32>
    %cst_18 = arith.constant dense<0.000000e+00> : vector<128x128xf32>
    %16 = tpu.matmul %14, %15, %cst_18 {dimension_numbers = #tpu.dot_dimension_numbers<[1], [0], [0], [1], [0, 0, 1, 1], [], []>} : vector<128x128xf32>, vector<128x128xf32>, vector<128x128xf32> -> vector<128x128xf32>
    %c0_19 = arith.constant 0 : index
    %c0_20 = arith.constant 0 : index
    %17 = vector.load %arg6[%c0_19, %c0_20] : memref<1x128xf32, #tpu.memory_space<vmem>>, vector<1x128xf32>
    %18 = vector.broadcast %17 : vector<1x128xf32> to vector<128x128xf32>
    %19 = arith.addf %16, %18 : vector<128x128xf32>
    %c0_21 = arith.constant 0 : index
    %c0_22 = arith.constant 0 : index
    %20 = vector.load %arg7[%c0_21, %c0_22] : memref<128x128xf32, #tpu.memory_space<vmem>>, vector<128x128xf32>
    tpu.vector_store %arg7[%c0_21, %c0_22], %19 {strides = array<i32>} : memref<128x128xf32, #tpu.memory_space<vmem>>, vector<128x128xf32>,
    return
  }
  func.func @transform_0(%arg0: i32) -> (i32, i32) {
    %c0_i32 = arith.constant 0 : i32
    %c0_i32_0 = arith.constant 0 : i32
    %c0_i32_1 = arith.constant 0 : i32
    return %c0_i32, %c0_i32_0 : i32, i32
  }
  func.func @transform_1(%arg0: i32) -> (i32, i32) {
    %c0_i32 = arith.constant 0 : i32
    %c0_i32_0 = arith.constant 0 : i32
    %c0_i32_1 = arith.constant 0 : i32
    return %c0_i32, %c0_i32_0 : i32, i32
  }
  func.func @transform_2(%arg0: i32) -> (i32, i32) {
    %c0_i32 = arith.constant 0 : i32
    %c0_i32_0 = arith.constant 0 : i32
    %c0_i32_1 = arith.constant 0 : i32
    return %c0_i32, %c0_i32_0 : i32, i32
  }
  func.func @transform_3(%arg0: i32) -> (i32, i32) {
    %c0_i32 = arith.constant 0 : i32
    %c0_i32_0 = arith.constant 0 : i32
    %c0_i32_1 = arith.constant 0 : i32
    return %c0_i32, %c0_i32_0 : i32, i32
  }
  func.func @transform_4(%arg0: i32) -> (i32, i32) {
    %c0_i32 = arith.constant 0 : i32
    %c0_i32_0 = arith.constant 0 : i32
    %c0_i32_1 = arith.constant 0 : i32
    return %c0_i32, %c0_i32_0 : i32, i32
  }
  func.func @transform_5(%arg0: i32) -> (i32, i32) {
    %c0_i32 = arith.constant 0 : i32
    %c0_i32_0 = arith.constant 0 : i32
    %c0_i32_1 = arith.constant 0 : i32
    return %c0_i32, %c0_i32_0 : i32, i32
  }
  func.func @transform_6(%arg0: i32) -> (i32, i32) {
    %c0_i32 = arith.constant 0 : i32
    %c0_i32_0 = arith.constant 0 : i32
    %c0_i32_1 = arith.constant 0 : i32
    return %c0_i32, %c0_i32_0 : i32, i32
  }
}

</mosaic_0001>

<bundles_post_ra>
// kernel: gcn_forward.1
= control target key start
LH: loop header
LB: loop body
LE: loop exit
PB: predicated region body
PF: predicated region fallthrough
CT: control target
= control target key end

     0   :  { %s1618_s1 = inlined_call_operand.vmem [shape: bf16[128,128], index: 1, kind: input, shape index: {}]   ;;  %s1619_s0 = inlined_call_operand.vmem [shape: bf16[128,128], index: 0, kind: input, shape index: {}]   ;;  %s1620_s2 = inlined_call_operand.vmem [shape: f32[128,128], index: 2, kind: input, shape index: {}]   ;;  %s1621_s4 = inlined_call_operand.vmem [shape: f32[128,128], index: 4, kind: input, shape index: {}]   ;;  %s1622_s3 = inlined_call_operand.vmem [shape: f32[1,128], index: 3, kind: input, shape index: {}]   ;;  %s1623_s5 = inlined_call_operand.vmem [shape: f32[1,128], index: 5, kind: input, shape index: {}]   ;;  %s1624_s6 = inlined_call_operand.vmem [shape: f32[128,128], index: 6, kind: output, shape index: {}]  }
   0x1   :  { %v1311_v0 = vld [vmem:[%s1618_s1 + $0x38] sm:$0xff]   ;;  %v1312_v1 = vld [vmem:[%s1618_s1 + $0x30] sm:$0xff]   ;;  %v1313_v2 = vld [vmem:[%s1618_s1 + $0x28] sm:$0xff]  }
   0x2   :  { %1135 = vmatprep.subr.bf16.mxu0 %v1311_v0  ;;  %v1314_v3 = vld [vmem:[%s1618_s1 + $0x20] sm:$0xff]   ;;  %v1315_v5 = vld [vmem:[%s1618_s1 + $0x18] sm:$0xff]   ;;  %v1316_v6 = vld [vmem:[%s1618_s1 + $0x10] sm:$0xff]  }
   0x3   :  { %1136 = vmatpush3.bf16.msra.mxu0 %v1311_v0  ;;  %v1319_v4 = vld [vmem:[%s1619_s0] sm:$0xff]   ;;  %v264_v7 = vld [vmem:[%s1620_s2 + $0x78] sm:$0xff]  ;;  %v263_v8 = vld [vmem:[%s1620_s2 + $0x70] sm:$0xff] }
   0x4   :  { %1137 = vmatprep.subr.bf16.mxu0 %v1312_v1  ;;  %1151 = vmatprep.mubr.bf16.mxu0 %v1319_v4  ;;  %v262_v9 = vld [vmem:[%s1620_s2 + $0x68] sm:$0xff]  ;;  %v261_v11 = vld [vmem:[%s1620_s2 + $0x60] sm:$0xff]  ;;  %v260_v12 = vld [vmem:[%s1620_s2 + $0x58] sm:$0xff] }
   0x5   :  { %1167 = vmatprep.subr.mxu1 %v264_v7  ;;  %v1317_v10 = vld [vmem:[%s1618_s1 + $0x8] sm:$0xff]   ;;  %v1318_v13 = vld [vmem:[%s1618_s1] sm:$0xff]   ;;  %v259_v14 = vld [vmem:[%s1620_s2 + $0x50] sm:$0xff] }
   0x6   :  { %1168 = vmatpush3.msra.mxu1 %v264_v7  ;;  %v258_v15 = vld [vmem:[%s1620_s2 + $0x48] sm:$0xff]  ;;  %v257_v16 = vld [vmem:[%s1620_s2 + $0x40] sm:$0xff]  ;;  %v256_v18 = vld [vmem:[%s1620_s2 + $0x38] sm:$0xff] }
   0x7   :  { %1138 = vmatpush3.bf16.msra.mxu0 %v1312_v1  ;;  %1169 = vmatprep.subr.mxu1 %v263_v8  ;;  %v1320_v17 = vld [vmem:[%s1619_s0 + $0x8] sm:$0xff]   ;;  %v1321_v19 = vld [vmem:[%s1619_s0 + $0x10] sm:$0xff]   ;;  %v253_v22 = vld [vmem:[%s1620_s2 + $0x20] sm:$0xff] }
   0x8   :  { %1139 = vmatprep.subr.bf16.mxu0 %v1313_v2  ;;  %1170 = vmatpush3.msra.mxu1 %v263_v8  ;;  %v255_v20 = vld [vmem:[%s1620_s2 + $0x30] sm:$0xff]  ;;  %v254_v21 = vld [vmem:[%s1620_s2 + $0x28] sm:$0xff]  ;;  %v1322_v23 = vld [vmem:[%s1619_s0 + $0x18] sm:$0xff]  }
   0x9   :  { %1171 = vmatprep.subr.mxu1 %v262_v9  ;;  %v252_v24 = vld [vmem:[%s1620_s2 + $0x18] sm:$0xff]  ;;  %v1323_v25 = vld [vmem:[%s1619_s0 + $0x20] sm:$0xff]   ;;  %v1324_v26 = vld [vmem:[%s1619_s0 + $0x28] sm:$0xff]  }
   0xa   :  { %1172 = vmatpush3.msra.mxu1 %v262_v9  ;;  %v1325_v27 = vld [vmem:[%s1619_s0 + $0x30] sm:$0xff]   ;;  %v1326_v28 = vld [vmem:[%s1619_s0 + $0x38] sm:$0xff]   ;;  %v250_v30 = vld [vmem:[%s1620_s2 + $0x8] sm:$0xff] }
   0xb   :  { %1140 = vmatpush3.bf16.msra.mxu0 %v1313_v2  ;;  %1173 = vmatprep.subr.mxu1 %v261_v11  ;;  %v251_v29 = vld [vmem:[%s1620_s2 + $0x10] sm:$0xff]  ;;  %v249_v31 = vld [vmem:[%s1620_s2] sm:$0xff]  ;;  %v753_v49 = vld [vmem:[%s1621_s4 + $0x78] sm:$0xff] }
   0xc   :  { %1141 = vmatprep.subr.bf16.mxu0 %v1314_v3  ;;  %1174 = vmatpush3.msra.mxu1 %v261_v11  ;;  %v1335_v48 = vld [vmem:[%s1619_s0] sm:$0xff]   ;;  %v752_v50 = vld [vmem:[%s1621_s4 + $0x70] sm:$0xff]  ;;  %v751_v51 = vld [vmem:[%s1621_s4 + $0x68] sm:$0xff] }
   0xd   :  { %1175 = vmatprep.subr.mxu1 %v260_v12  ;;  %v750_v52 = vld [vmem:[%s1621_s4 + $0x60] sm:$0xff]  ;;  %v749_v53 = vld [vmem:[%s1621_s4 + $0x58] sm:$0xff]  ;;  %v748_v54 = vld [vmem:[%s1621_s4 + $0x50] sm:$0xff] }
   0xe   :  { %1176 = vmatpush3.msra.mxu1 %v260_v12  ;;  %v747_v55 = vld [vmem:[%s1621_s4 + $0x48] sm:$0xff]  ;;  %v746_v56 = vld [vmem:[%s1621_s4 + $0x40] sm:$0xff]  ;;  %v745_v57 = vld [vmem:[%s1621_s4 + $0x38] sm:$0xff] }
   0xf   :  { %1142 = vmatpush3.bf16.msra.mxu0 %v1314_v3  ;;  %1177 = vmatprep.subr.mxu1 %v259_v14  ;;  %v744_v58 = vld [vmem:[%s1621_s4 + $0x30] sm:$0xff]  ;;  %v743_v59 = vld [vmem:[%s1621_s4 + $0x28] sm:$0xff]  ;;  %v742_v60 = vld [vmem:[%s1621_s4 + $0x20] sm:$0xff] }
  0x10   :  { %1143 = vmatprep.subr.bf16.mxu0 %v1315_v5  ;;  %1178 = vmatpush3.msra.mxu1 %v259_v14  ;;  %v741_v61 = vld [vmem:[%s1621_s4 + $0x18] sm:$0xff]  ;;  %v1519_v62 = vld [vmem:[%s1622_s3] ss:$0 sm:$0xff] }
  0x11   :  { %1179 = vmatprep.subr.mxu1 %v258_v15 }
  0x12   :  { %1180 = vmatpush3.msra.mxu1 %v258_v15 }
  0x13   :  { %1144 = vmatpush3.bf16.msra.mxu0 %v1315_v5  ;;  %1181 = vmatprep.subr.mxu1 %v257_v16 }
  0x14   :  { %1145 = vmatprep.subr.bf16.mxu0 %v1316_v6  ;;  %1182 = vmatpush3.msra.mxu1 %v257_v16 }
  0x15   :  { %1183 = vmatprep.subr.mxu1 %v256_v18 }
  0x16   :  { %1184 = vmatpush3.msra.mxu1 %v256_v18 }
  0x17   :  { %1146 = vmatpush3.bf16.msra.mxu0 %v1316_v6  ;;  %1185 = vmatprep.subr.mxu1 %v255_v20 }
  0x18   :  { %1147 = vmatprep.subr.bf16.mxu0 %v1317_v10  ;;  %1186 = vmatpush3.msra.mxu1 %v255_v20 }
  0x19   :  { %1187 = vmatprep.subr.mxu1 %v254_v21 }
  0x1a   :  { %1188 = vmatpush3.msra.mxu1 %v254_v21 }
  0x1b   :  { %1148 = vmatpush3.bf16.msra.mxu0 %v1317_v10  ;;  %1189 = vmatprep.subr.mxu1 %v253_v22 }
  0x1c   :  { %1149 = vmatprep.subr.bf16.mxu0 %v1318_v13  ;;  %1190 = vmatpush3.msra.mxu1 %v253_v22 }
  0x1d   :  { %1191 = vmatprep.subr.mxu1 %v252_v24 }
  0x1e   :  { %1192 = vmatpush3.msra.mxu1 %v252_v24 }
  0x1f   :  { %1150 = vmatpush3.bf16.msra.mxu0 %v1318_v13  ;;  %1193 = vmatprep.subr.mxu1 %v251_v29 }
  0x20   :  { %1194 = vmatpush3.msra.mxu1 %v251_v29 }
  0x21   :  { %1195 = vmatprep.subr.mxu1 %v250_v30 }
  0x22   :  { %1152 = vmatmul.mubr.bf16.vlgmr.msra.gmra.mxu0 %v1320_v17  ;;  %1196 = vmatpush3.msra.mxu1 %v250_v30 }
  0x23   :  { %1155 = vmatprep.mubr.bf16.mxu0 %v1321_v19  ;;  %1197 = vmatprep.subr.mxu1 %v249_v31 }
  0x24   :  { %1198 = vmatpush3.msra.mxu1 %v249_v31 }
  0x25   :  { %1255 = vmatprep.subr.mxu1 %v753_v49 }
  0x2a   :  { %1156 = vmatmul.mubr.bf16.gmra.mxu0 %v1322_v23 }
  0x2b   :  { %1159 = vmatprep.mubr.bf16.mxu0 %v1323_v25 }
  0x32   :  { %1160 = vmatmul.mubr.bf16.gmra.mxu0 %v1324_v26 }
  0x33   :  { %1163 = vmatprep.mubr.bf16.mxu0 %v1325_v27 }
  0x3a   :  { %1164 = vmatmul.mubr.bf16.gmra.mxu0 %v1326_v28 }
  0x3b   :  { %1239 = vmatprep.mubr.bf16.mxu0 %v1335_v48 }
  0xe2   :  { %v1153_v32 = vpop.f32.mrf.mxu0 }
  0xe4   :  { %v186_v33 = vpop.f32.mrf.mxu0 }
  0xe5   :  { %1199 = vmatprep.mubr.f32.mxu1 %v186_v33 }
  0xe6   :  { %v1154_v34 = vpop.f32.mrf.mxu0 }
  0xe8   :  { %v189_v35 = vpop.f32.mrf.mxu0 }
  0xe9   :  { %1200 = vmatmul.mubr.f32.vlgmr.msra.gmra.mxu1 %v189_v35 }
  0xea   :  { %v1157_v36 = vpop.f32.mrf.mxu0  ;;  %1202 = vmatprep.mubr.f32.mxu1 %v1153_v32  ;;  %1256 = vmatpush3.msra.mxu1 %v753_v49 }
  0xeb   :  { %1257 = vmatprep.subr.mxu1 %v752_v50 }
  0xec   :  { %v202_v37 = vpop.f32.mrf.mxu0  ;;  %1258 = vmatpush3.msra.mxu1 %v752_v50 }
  0xed   :  { %1203 = vmatmul.mubr.f32.gmra.mxu1 %v1154_v34  ;;  %1259 = vmatprep.subr.mxu1 %v751_v51 }
  0xee   :  { %v1158_v38 = vpop.f32.mrf.mxu0  ;;  %1205 = vmatprep.mubr.f32.mxu1 %v202_v37  ;;  %1260 = vmatpush3.msra.mxu1 %v751_v51 }
  0xef   :  { %1261 = vmatprep.subr.mxu1 %v750_v52 }
  0xf0   :  { %v205_v39 = vpop.f32.mrf.mxu0  ;;  %1262 = vmatpush3.msra.mxu1 %v750_v52 }
  0xf1   :  { %1206 = vmatmul.mubr.f32.gmra.mxu1 %v205_v39  ;;  %1263 = vmatprep.subr.mxu1 %v749_v53 }
  0xf2   :  { %v1161_v40 = vpop.f32.mrf.mxu0  ;;  %1208 = vmatprep.mubr.f32.mxu1 %v1157_v36  ;;  %1264 = vmatpush3.msra.mxu1 %v749_v53 }
  0xf3   :  { %1265 = vmatprep.subr.mxu1 %v748_v54 }
  0xf4   :  { %v218_v41 = vpop.f32.mrf.mxu0  ;;  %1266 = vmatpush3.msra.mxu1 %v748_v54 }
  0xf5   :  { %1209 = vmatmul.mubr.f32.gmra.mxu1 %v1158_v38  ;;  %1267 = vmatprep.subr.mxu1 %v747_v55 }
  0xf6   :  { %v1162_v42 = vpop.f32.mrf.mxu0  ;;  %1211 = vmatprep.mubr.f32.mxu1 %v218_v41  ;;  %1268 = vmatpush3.msra.mxu1 %v747_v55 }
  0xf7   :  { %1269 = vmatprep.subr.mxu1 %v746_v56 }
  0xf8   :  { %v221_v43 = vpop.f32.mrf.mxu0  ;;  %1270 = vmatpush3.msra.mxu1 %v746_v56 }
  0xf9   :  { %1212 = vmatmul.mubr.f32.gmra.mxu1 %v221_v43  ;;  %1271 = vmatprep.subr.mxu1 %v745_v57 }
  0xfa   :  { %v1165_v44 = vpop.f32.mrf.mxu0  ;;  %1214 = vmatprep.mubr.f32.mxu1 %v1161_v40  ;;  %1272 = vmatpush3.msra.mxu1 %v745_v57 }
  0xfb   :  { %1273 = vmatprep.subr.mxu1 %v744_v58 }
  0xfc   :  { %v234_v45 = vpop.f32.mrf.mxu0  ;;  %1274 = vmatpush3.msra.mxu1 %v744_v58 }
  0xfd   :  { %1215 = vmatmul.mubr.f32.gmra.mxu1 %v1162_v42  ;;  %1275 = vmatprep.subr.mxu1 %v743_v59 }
  0xfe   :  { %v1166_v46 = vpop.f32.mrf.mxu0  ;;  %1217 = vmatprep.mubr.f32.mxu1 %v234_v45  ;;  %1276 = vmatpush3.msra.mxu1 %v743_v59 }
  0xff   :  { %1277 = vmatprep.subr.mxu1 %v742_v60 }
 0x100   :  { %v237_v47 = vpop.f32.mrf.mxu0  ;;  %1278 = vmatpush3.msra.mxu1 %v742_v60 }
 0x101   :  { %1218 = vmatmul.mubr.f32.gmra.mxu1 %v237_v47  ;;  %1279 = vmatprep.subr.mxu1 %v741_v61 }
 0x102   :  { %1220 = vmatprep.mubr.f32.mxu1 %v1165_v44  ;;  %1280 = vmatpush3.msra.mxu1 %v741_v61 }
 0x105   :  { %1221 = vmatmul.mubr.f32.gmra.mxu1 %v1166_v46 }
 0x1a9   :  { %v1201_v63 = vpop.f32.mrf.mxu1 }
 0x1aa   :  { %v344_v0 = vadd.f32 %v1201_v63, %v1519_v62  ;;  %v1336_v63 = vld [vmem:[%s1619_s0 + $0x8] sm:$0xff]  }
 0x1ab   :  { %v338_v1 = vpop.f32.mrf.mxu1 }
 0x1ac   :  { %v339_v2 = vadd.f32 %v1519_v62, %v338_v1  ;;  %v418_v4 = vmax.f32 %v344_v0, 0.0  ;;  %v1337_v0 = vld [vmem:[%s1619_s0 + $0x10] sm:$0xff]   ;;  %v1338_v1 = vld [vmem:[%s1619_s0 + $0x18] sm:$0xff]  }
 0x1ad   :  { %v1204_v3 = vpop.f32.mrf.mxu1 }
 0x1ae   :  { %v417_v5 = vmax.f32 %v339_v2, 0.0  ;;  %v354_v6 = vadd.f32 %v1204_v3, %v1519_v62  ;;  %v1339_v2 = vld [vmem:[%s1619_s0 + $0x20] sm:$0xff]   ;;  %v1340_v3 = vld [vmem:[%s1619_s0 + $0x28] sm:$0xff]  }
 0x1af   :  { %v348_v7 = vpop.f32.mrf.mxu1 }
 0x1b0   :  { %v995_v8 = vpack.c.bf16 %v418_v4, %v417_v5  ;;  %v349_v9 = vadd.f32 %v1519_v62, %v348_v7  ;;  %v420_v11 = vmax.f32 %v354_v6, 0.0  ;;  %v1341_v4 = vld [vmem:[%s1619_s0 + $0x30] sm:$0xff]   ;;  %v1342_v5 = vld [vmem:[%s1619_s0 + $0x38] sm:$0xff]   ;;  %v739_v7 = vld [vmem:[%s1621_s4 + $0x8] sm:$0xff] }
 0x1b1   :  { %v1207_v10 = vpop.f32.mrf.mxu1  ;;  %v740_v6 = vld [vmem:[%s1621_s4 + $0x10] sm:$0xff] }
 0x1b2   :  { %996 = vst [vmem:[#allocation2] sm:$0xff] %v995_v8   ;;  %v419_v12 = vmax.f32 %v349_v9, 0.0  ;;  %v364_v13 = vadd.f32 %v1207_v10, %v1519_v62  ;;  %1281 = vmatprep.subr.mxu1 %v740_v6  ;;  %v738_v8 = vld [vmem:[%s1621_s4] sm:$0xff] }
 0x1b3   :  { %v358_v14 = vpop.f32.mrf.mxu1  ;;  %1282 = vmatpush3.msra.mxu1 %v740_v6 }
 0x1b4   :  { %v1000_v15 = vpack.c.bf16 %v420_v11, %v419_v12  ;;  %v359_v16 = vadd.f32 %v1519_v62, %v358_v14  ;;  %v422_v18 = vmax.f32 %v364_v13, 0.0  ;;  %1283 = vmatprep.subr.mxu1 %v739_v7 }
 0x1b5   :  { %v1210_v17 = vpop.f32.mrf.mxu1  ;;  %1284 = vmatpush3.msra.mxu1 %v739_v7 }
 0x1b6   :  { %1032 = vst [vmem:[#allocation2 + $0x8] sm:$0xff] %v1000_v15   ;;  %v421_v19 = vmax.f32 %v359_v16, 0.0  ;;  %v374_v20 = vadd.f32 %v1210_v17, %v1519_v62  ;;  %1285 = vmatprep.subr.mxu1 %v738_v8 }
 0x1b7   :  { %v368_v21 = vpop.f32.mrf.mxu1  ;;  %1286 = vmatpush3.msra.mxu1 %v738_v8 }
 0x1b8   :  { %v1005_v22 = vpack.c.bf16 %v422_v18, %v421_v19  ;;  %v369_v23 = vadd.f32 %v1519_v62, %v368_v21  ;;  %v424_v25 = vmax.f32 %v374_v20, 0.0 }
 0x1b9   :  { %v1213_v24 = vpop.f32.mrf.mxu1 }
 0x1ba   :  { %1033 = vst [vmem:[#allocation2 + $0x10] sm:$0xff] %v1005_v22   ;;  %v423_v26 = vmax.f32 %v369_v23, 0.0  ;;  %v384_v27 = vadd.f32 %v1213_v24, %v1519_v62 }
 0x1bb   :  { %v378_v28 = vpop.f32.mrf.mxu1 }
 0x1bc   :  { %v1010_v29 = vpack.c.bf16 %v424_v25, %v423_v26  ;;  %v379_v30 = vadd.f32 %v1519_v62, %v378_v28  ;;  %v426_v32 = vmax.f32 %v384_v27, 0.0  ;;  %v975_v25 = vld [vmem:[%s1623_s5] ss:$0 sm:$0xff] }
 0x1bd   :  { %v1216_v31 = vpop.f32.mrf.mxu1  ;;  %v1333_v61 = vld [vmem:[#allocation2 + $0x8] sm:$0xff]  }
 0x1be   :  { %1034 = vst [vmem:[#allocation2 + $0x18] sm:$0xff] %v1010_v29   ;;  %v425_v33 = vmax.f32 %v379_v30, 0.0  ;;  %v394_v34 = vadd.f32 %v1216_v31, %v1519_v62 }
 0x1bf   :  { %v388_v35 = vpop.f32.mrf.mxu1 }
 0x1c0   :  { %v1015_v36 = vpack.c.bf16 %v426_v32, %v425_v33  ;;  %v389_v37 = vadd.f32 %v1519_v62, %v388_v35  ;;  %v428_v39 = vmax.f32 %v394_v34, 0.0 }
 0x1c1   :  { %v1219_v38 = vpop.f32.mrf.mxu1  ;;  %v1332_v60 = vld [vmem:[#allocation2 + $0x10] sm:$0xff]  }
 0x1c2   :  { %1035 = vst [vmem:[#allocation2 + $0x20] sm:$0xff] %v1015_v36   ;;  %v427_v40 = vmax.f32 %v389_v37, 0.0  ;;  %v404_v41 = vadd.f32 %v1219_v38, %v1519_v62 }
 0x1c3   :  { %v398_v42 = vpop.f32.mrf.mxu1 }
 0x1c4   :  { %v1020_v43 = vpack.c.bf16 %v428_v39, %v427_v40  ;;  %v399_v44 = vadd.f32 %v1519_v62, %v398_v42  ;;  %v430_v46 = vmax.f32 %v404_v41, 0.0 }
 0x1c5   :  { %v1222_v45 = vpop.f32.mrf.mxu1  ;;  %v1331_v59 = vld [vmem:[#allocation2 + $0x18] sm:$0xff]  }
 0x1c6   :  { %1036 = vst [vmem:[#allocation2 + $0x28] sm:$0xff] %v1020_v43   ;;  %v429_v47 = vmax.f32 %v399_v44, 0.0  ;;  %v414_v48 = vadd.f32 %v1222_v45, %v1519_v62 }
 0x1c7   :  { %v408_v49 = vpop.f32.mrf.mxu1 }
 0x1c8   :  { %v1025_v50 = vpack.c.bf16 %v430_v46, %v429_v47  ;;  %v409_v51 = vadd.f32 %v1519_v62, %v408_v49  ;;  %v432_v52 = vmax.f32 %v414_v48, 0.0  ;;  %v1334_v62 = vld [vmem:[#allocation2] sm:$0xff]  }
 0x1c9   :  { %v1330_v58 = vld [vmem:[#allocation2 + $0x20] sm:$0xff]  }
 0x1ca   :  { %1037 = vst [vmem:[#allocation2 + $0x30] sm:$0xff] %v1025_v50   ;;  %v431_v53 = vmax.f32 %v409_v51, 0.0 }
 0x1cc   :  { %v1030_v54 = vpack.c.bf16 %v432_v52, %v431_v53 }
 0x1cd   :  { %v1329_v57 = vld [vmem:[#allocation2 + $0x28] sm:$0xff]  }
 0x1ce   :  { %1038 = vst [vmem:[#allocation2 + $0x38] sm:$0xff] %v1030_v54  }
 0x1d1   :  { %v1328_v56 = vld [vmem:[#allocation2 + $0x30] sm:$0xff]  }
 0x1d5   :  { %v1327_v55 = vld [vmem:[#allocation2 + $0x38] sm:$0xff]  }
 0x1d6   :  { %1223 = vmatprep.subr.bf16.mxu0 %v1327_v55 }
 0x1d7   :  { %1224 = vmatpush3.bf16.msra.mxu0 %v1327_v55 }
 0x1d8   :  { %1225 = vmatprep.subr.bf16.mxu0 %v1328_v56 }
 0x1db   :  { %1226 = vmatpush3.bf16.msra.mxu0 %v1328_v56 }
 0x1dc   :  { %1227 = vmatprep.subr.bf16.mxu0 %v1329_v57 }
 0x1df   :  { %1228 = vmatpush3.bf16.msra.mxu0 %v1329_v57 }
 0x1e0   :  { %1229 = vmatprep.subr.bf16.mxu0 %v1330_v58 }
 0x1e3   :  { %1230 = vmatpush3.bf16.msra.mxu0 %v1330_v58 }
 0x1e4   :  { %1231 = vmatprep.subr.bf16.mxu0 %v1331_v59 }
 0x1e7   :  { %1232 = vmatpush3.bf16.msra.mxu0 %v1331_v59 }
 0x1e8   :  { %1233 = vmatprep.subr.bf16.mxu0 %v1332_v60 }
 0x1eb   :  { %1234 = vmatpush3.bf16.msra.mxu0 %v1332_v60 }
 0x1ec   :  { %1235 = vmatprep.subr.bf16.mxu0 %v1333_v61 }
 0x1ef   :  { %1236 = vmatpush3.bf16.msra.mxu0 %v1333_v61 }
 0x1f0   :  { %1237 = vmatprep.subr.bf16.mxu0 %v1334_v62 }
 0x1f3   :  { %1238 = vmatpush3.bf16.msra.mxu0 %v1334_v62 }
 0x1f6   :  { %1240 = vmatmul.mubr.bf16.vlgmr.msra.gmra.mxu0 %v1336_v63 }
 0x1f7   :  { %1243 = vmatprep.mubr.bf16.mxu0 %v1337_v0 }
 0x1fe   :  { %1244 = vmatmul.mubr.bf16.gmra.mxu0 %v1338_v1 }
 0x1ff   :  { %1247 = vmatprep.mubr.bf16.mxu0 %v1339_v2 }
 0x206   :  { %1248 = vmatmul.mubr.bf16.gmra.mxu0 %v1340_v3 }
 0x207   :  { %1251 = vmatprep.mubr.bf16.mxu0 %v1341_v4 }
 0x20e   :  { %1252 = vmatmul.mubr.bf16.gmra.mxu0 %v1342_v5 }
 0x2b6   :  { %v1241_v9 = vpop.f32.mrf.mxu0 }
 0x2b8   :  { %v675_v10 = vpop.f32.mrf.mxu0 }
 0x2b9   :  { %1287 = vmatprep.mubr.f32.mxu1 %v675_v10 }
 0x2ba   :  { %v1242_v11 = vpop.f32.mrf.mxu0 }
 0x2bc   :  { %v678_v12 = vpop.f32.mrf.mxu0 }
 0x2bd   :  { %1288 = vmatmul.mubr.f32.vlgmr.msra.gmra.mxu1 %v678_v12 }
 0x2be   :  { %v1245_v13 = vpop.f32.mrf.mxu0  ;;  %1290 = vmatprep.mubr.f32.mxu1 %v1241_v9 }
 0x2c0   :  { %v691_v14 = vpop.f32.mrf.mxu0 }
 0x2c1   :  { %1291 = vmatmul.mubr.f32.gmra.mxu1 %v1242_v11 }
 0x2c2   :  { %v1246_v15 = vpop.f32.mrf.mxu0  ;;  %1293 = vmatprep.mubr.f32.mxu1 %v691_v14 }
 0x2c4   :  { %v694_v16 = vpop.f32.mrf.mxu0 }
 0x2c5   :  { %1294 = vmatmul.mubr.f32.gmra.mxu1 %v694_v16 }
 0x2c6   :  { %v1249_v17 = vpop.f32.mrf.mxu0  ;;  %1296 = vmatprep.mubr.f32.mxu1 %v1245_v13 }
 0x2c8   :  { %v707_v18 = vpop.f32.mrf.mxu0 }
 0x2c9   :  { %1297 = vmatmul.mubr.f32.gmra.mxu1 %v1246_v15 }
 0x2ca   :  { %v1250_v19 = vpop.f32.mrf.mxu0  ;;  %1299 = vmatprep.mubr.f32.mxu1 %v707_v18 }
 0x2cc   :  { %v710_v20 = vpop.f32.mrf.mxu0 }
 0x2cd   :  { %1300 = vmatmul.mubr.f32.gmra.mxu1 %v710_v20 }
 0x2ce   :  { %v1253_v21 = vpop.f32.mrf.mxu0  ;;  %1302 = vmatprep.mubr.f32.mxu1 %v1249_v17 }
 0x2d0   :  { %v723_v22 = vpop.f32.mrf.mxu0 }
 0x2d1   :  { %1303 = vmatmul.mubr.f32.gmra.mxu1 %v1250_v19 }
 0x2d2   :  { %v1254_v23 = vpop.f32.mrf.mxu0  ;;  %1305 = vmatprep.mubr.f32.mxu1 %v723_v22 }
 0x2d4   :  { %v726_v24 = vpop.f32.mrf.mxu0 }
 0x2d5   :  { %1306 = vmatmul.mubr.f32.gmra.mxu1 %v726_v24 }
 0x2d6   :  { %1308 = vmatprep.mubr.f32.mxu1 %v1253_v21 }
 0x2d9   :  { %1309 = vmatmul.mubr.f32.gmra.mxu1 %v1254_v23 }
 0x37d   :  { %v1289_v26 = vpop.f32.mrf.mxu1 }
 0x37e   :  { %v833_v27 = vadd.f32 %v1289_v26, %v975_v25 }
 0x37f   :  { %v827_v28 = vpop.f32.mrf.mxu1 }
 0x380   :  { %907 = vst [vmem:[%s1624_s6 + $0x8] sm:$0xff] %v833_v27  ;;  %v828_v29 = vadd.f32 %v975_v25, %v827_v28 }
 0x381   :  { %v1292_v30 = vpop.f32.mrf.mxu1 }
 0x382   :  { %906 = vst [vmem:[%s1624_s6] sm:$0xff] %v828_v29  ;;  %v843_v31 = vadd.f32 %v1292_v30, %v975_v25 }
 0x383   :  { %v837_v32 = vpop.f32.mrf.mxu1 }
 0x384   :  { %909 = vst [vmem:[%s1624_s6 + $0x18] sm:$0xff] %v843_v31  ;;  %v838_v33 = vadd.f32 %v975_v25, %v837_v32 }
 0x385   :  { %v1295_v34 = vpop.f32.mrf.mxu1 }
 0x386   :  { %908 = vst [vmem:[%s1624_s6 + $0x10] sm:$0xff] %v838_v33  ;;  %v853_v35 = vadd.f32 %v1295_v34, %v975_v25 }
 0x387   :  { %v847_v36 = vpop.f32.mrf.mxu1 }
 0x388   :  { %911 = vst [vmem:[%s1624_s6 + $0x28] sm:$0xff] %v853_v35  ;;  %v848_v37 = vadd.f32 %v975_v25, %v847_v36 }
 0x389   :  { %v1298_v38 = vpop.f32.mrf.mxu1 }
 0x38a   :  { %910 = vst [vmem:[%s1624_s6 + $0x20] sm:$0xff] %v848_v37  ;;  %v863_v39 = vadd.f32 %v1298_v38, %v975_v25 }
 0x38b   :  { %v857_v40 = vpop.f32.mrf.mxu1 }
 0x38c   :  { %913 = vst [vmem:[%s1624_s6 + $0x38] sm:$0xff] %v863_v39  ;;  %v858_v41 = vadd.f32 %v975_v25, %v857_v40 }
 0x38d   :  { %v1301_v42 = vpop.f32.mrf.mxu1 }
 0x38e   :  { %912 = vst [vmem:[%s1624_s6 + $0x30] sm:$0xff] %v858_v41  ;;  %v873_v43 = vadd.f32 %v1301_v42, %v975_v25 }
 0x38f   :  { %v867_v44 = vpop.f32.mrf.mxu1 }
 0x390   :  { %915 = vst [vmem:[%s1624_s6 + $0x48] sm:$0xff] %v873_v43  ;;  %v868_v45 = vadd.f32 %v975_v25, %v867_v44 }
 0x391   :  { %v1304_v46 = vpop.f32.mrf.mxu1 }
 0x392   :  { %914 = vst [vmem:[%s1624_s6 + $0x40] sm:$0xff] %v868_v45  ;;  %v883_v47 = vadd.f32 %v1304_v46, %v975_v25 }
 0x393   :  { %v877_v48 = vpop.f32.mrf.mxu1 }
 0x394   :  { %917 = vst [vmem:[%s1624_s6 + $0x58] sm:$0xff] %v883_v47  ;;  %v878_v49 = vadd.f32 %v975_v25, %v877_v48 }
 0x395   :  { %v1307_v50 = vpop.f32.mrf.mxu1 }
 0x396   :  { %916 = vst [vmem:[%s1624_s6 + $0x50] sm:$0xff] %v878_v49  ;;  %v893_v51 = vadd.f32 %v1307_v50, %v975_v25 }
 0x397   :  { %v887_v52 = vpop.f32.mrf.mxu1 }
 0x398   :  { %919 = vst [vmem:[%s1624_s6 + $0x68] sm:$0xff] %v893_v51  ;;  %v888_v53 = vadd.f32 %v975_v25, %v887_v52 }
 0x399   :  { %v1310_v54 = vpop.f32.mrf.mxu1 }
 0x39a   :  { %918 = vst [vmem:[%s1624_s6 + $0x60] sm:$0xff] %v888_v53  ;;  %v903_v55 = vadd.f32 %v1310_v54, %v975_v25 }
 0x39b   :  { %v897_v56 = vpop.f32.mrf.mxu1 }
 0x39c   :  { %921 = vst [vmem:[%s1624_s6 + $0x78] sm:$0xff] %v903_v55  ;;  %v898_v57 = vadd.f32 %v975_v25, %v897_v56 }
 0x39e   :  { %920 = vst [vmem:[%s1624_s6 + $0x70] sm:$0xff] %v898_v57 }

</bundles_post_ra>
